<compile_context>
chip_gen: v5e
topology: v5e:2x2
jax: 0.10.0
libtpu: 0.0.40
codegen_flags: <defaults>
</compile_context>

<pallas_src>
import functools

import jax
import jax.numpy as jnp
from jax.experimental import pallas as pl
from jax.experimental.pallas import tpu as pltpu


K_PAD = 32       # encoder contraction dim 26 -> 32 (zero-padded)
TB_MAX = 2048    # max batch-tile rows (amortizes ~0.35us/grid-step overhead)


def _round_up(x, m):
    return (x + m - 1) // m * m


def _cdiv(a, b):
    return -(-a // b)


# --------------------------------------------------------------------------- #
# Kernel
# --------------------------------------------------------------------------- #
def policy_kernel(
    state_ref,                 # (TB, 32)   bf16 (padded from (B, 26))
    w1_ref, b1_ref,            # (32, 128)  bf16, (1, 128) f32   (fused enc+fc1)
    w2_ref, b2_ref,            # (128, 64)  bf16, (1, 64)  f32
    w3_ref, b3_ref,            # (64, Ap)   bf16, (1, Ap)  f32   (Ap = A padded to 128)
    logits_ref,                # (TB, Ap)   bf16
    *, inv_a, value_col,
):
    x = state_ref[...]                                        # already bf16

    # fused task_encoder+fc1: Linear(26->128) + ReLU
    h1 = jnp.dot(x, w1_ref[...], preferred_element_type=jnp.float32) + b1_ref[...]
    h1 = jnp.maximum(h1, 0.0)

    # fc2: Linear(128 -> 64) + ReLU
    h2 = jnp.dot(h1.astype(jnp.bfloat16), w2_ref[...],
                 preferred_element_type=jnp.float32) + b2_ref[...]
    h2 = jnp.maximum(h2, 0.0)

    # fc3: Linear(64 -> action_dim), N padded to a multiple of 128
    logits = jnp.dot(h2.astype(jnp.bfloat16), w3_ref[...],
                     preferred_element_type=jnp.float32) + b3_ref[...]

    if value_col is not None:
        # Padded logit columns are exactly 0 (zero-padded w3/b3), so a full-lane
        # sum equals the sum over the A logical actions. Stash value into the
        # spare padded lane `value_col` so the store stays one unmasked vst.
        value = jnp.sum(logits, axis=-1, keepdims=True) * inv_a
        col = jax.lax.broadcasted_iota(jnp.int32, logits.shape, 1)
        logits = jnp.where(col == value_col, value, logits)

    logits_ref[...] = logits.astype(logits_ref.dtype)


# --------------------------------------------------------------------------- #
# Wrapper
# --------------------------------------------------------------------------- #
def _xla_forward(state, params, action_dim):
    """Plain-XLA path for tiny batches where pallas_call fixed cost dominates."""
    xp = jnp.pad(state, ((0, 0), (0, K_PAD - state.shape[1]))).astype(jnp.bfloat16)
    h1 = jnp.maximum(jnp.dot(xp, params["w1"],
                             preferred_element_type=jnp.float32) + params["b1"], 0.0)
    h2 = jnp.maximum(jnp.dot(h1.astype(jnp.bfloat16), params["w2"],
                             preferred_element_type=jnp.float32) + params["b2"], 0.0)
    logits = jnp.dot(h2.astype(jnp.bfloat16), params["w3"],
                     preferred_element_type=jnp.float32) + params["b3"]
    logits = logits[:, :action_dim]
    value = jnp.mean(logits, axis=-1)
    return logits, value, jnp.zeros_like(value)


def policy_network_forward(state, params, action_dim, graph_data=None, *,
                           small_batch_threshold=0):
    """state: (B, 26) f32. params: prepare_params() output. graph_data is unused
    (matches the reference forward). Returns (logits (B,A) f32, value (B,) f32,
    priority (B,) f32)."""
    del graph_data  # unused by the reference PolicyNetwork.forward
    B, K = state.shape
    A_pad = params["w3"].shape[1]

    if B <= small_batch_threshold:
        return _xla_forward(state, params, action_dim)

    # Batch tiling: multiples of 16 (bf16 sublane packing); target >= 2 grid
    # steps when the batch allows it so v7x's two TensorCores both get work.
    B16 = _round_up(max(B, 1), 16)
    TB = min(TB_MAX, max(16, _round_up(_cdiv(B16, 2), 16)))
    B_pad = _round_up(B16, TB)
    grid = (B_pad // TB,)

    state_p = jnp.pad(state, ((0, B_pad - B), (0, K_PAD - K))).astype(jnp.bfloat16)

    value_col = action_dim if action_dim < A_pad else None

    resident = lambda shape: pl.BlockSpec(shape, lambda i: (0, 0))
    in_specs = [
        pl.BlockSpec((TB, K_PAD), lambda i: (i, 0)),           # state: batch-tiled
        resident(params["w1"].shape), resident(params["b1"].shape),
        resident(params["w2"].shape), resident(params["b2"].shape),
        resident(params["w3"].shape), resident(params["b3"].shape),
    ]
    out_specs = pl.BlockSpec((TB, A_pad), lambda i: (i, 0))
    out_shape = jax.ShapeDtypeStruct((B_pad, A_pad), jnp.bfloat16)

    # Advisory cost estimate so XLA schedules sensibly around the custom call.
    flops = 2 * B_pad * (K_PAD * 128 + 128 * 64 + 64 * A_pad)
    weight_bytes = 2 * (K_PAD * 128 + 128 * 64 + 64 * A_pad)           # bf16
    bias_bytes = 4 * (128 + 64 + A_pad)                                # f32
    bytes_accessed = (B_pad * K_PAD * 2 + weight_bytes + bias_bytes
                      + B_pad * A_pad * 2)

    logits_pad = pl.pallas_call(
        functools.partial(policy_kernel, inv_a=1.0 / action_dim, value_col=value_col),
        grid=grid,
        in_specs=in_specs,
        out_specs=out_specs,
        out_shape=out_shape,
        compiler_params=pltpu.CompilerParams(dimension_semantics=("parallel",)),
        cost_estimate=pl.CostEstimate(flops=flops, transcendentals=0,
                                      bytes_accessed=bytes_accessed),
    )(
        state_p,
        params["w1"], params["b1"],
        params["w2"], params["b2"],
        params["w3"], params["b3"],
    )

    logits = logits_pad[:B, :action_dim].astype(jnp.float32)
    if value_col is not None:
        value = logits_pad[:B, value_col].astype(jnp.float32)
    else:
        value = jnp.mean(logits, axis=-1)
    priority = jnp.zeros_like(value)
    return logits, value, priority


# --------------------------------------------------------------------------- #
# Parameter prep (mirrors PyTorch nn.Linear; weights stored as (in, out))
# --------------------------------------------------------------------------- #
def init_params(key, action_dim):
    dims = {"enc": (26, 64), "1": (64, 128), "2": (128, 64), "3": (64, action_dim)}
    params = {}
    for name, (fan_in, fan_out) in dims.items():
        key, kw, kb = jax.random.split(key, 3)
        bound = 1.0 / (fan_in ** 0.5)
        wkey = "w_enc" if name == "enc" else f"w{name}"
        bkey = "b_enc" if name == "enc" else f"b{name}"
        params[wkey] = jax.random.uniform(kw, (fan_in, fan_out), jnp.float32, -bound, bound)
        params[bkey] = jax.random.uniform(kb, (1, fan_out), jnp.float32, -bound, bound)
    return params


def prepare_params(raw):
    """Fold task_encoder into fc1 (product done in f32), pad K 26->32 and
    A -> multiple of 128, store weights bf16 (MXU operands), biases f32."""
    A = raw["w3"].shape[1]
    A_pad = _round_up(A, 128)

    w_f1 = raw["w_enc"].astype(jnp.float32) @ raw["w1"].astype(jnp.float32)   # (26,128)
    b_f1 = raw["b_enc"].astype(jnp.float32) @ raw["w1"].astype(jnp.float32) + raw["b1"]
    w_f1 = jnp.pad(w_f1, ((0, K_PAD - w_f1.shape[0]), (0, 0)))

    w3 = jnp.pad(raw["w3"], ((0, 0), (0, A_pad - A)))
    b3 = jnp.pad(raw["b3"], ((0, 0), (0, A_pad - A)))
    return {
        "w1": w_f1.astype(jnp.bfloat16), "b1": b_f1.astype(jnp.float32),
        "w2": raw["w2"].astype(jnp.bfloat16), "b2": raw["b2"].astype(jnp.float32),
        "w3": w3.astype(jnp.bfloat16), "b3": b3.astype(jnp.float32),
    }


# --------------------------------------------------------------------------- #
# Reference: unfused, full-f32 math (true PolicyNetwork.forward semantics)
# --------------------------------------------------------------------------- #
def ref_forward(state, raw, action_dim):
    t = state @ raw["w_enc"] + raw["b_enc"]
    h1 = jnp.maximum(t @ raw["w1"] + raw["b1"], 0.0)
    h2 = jnp.maximum(h1 @ raw["w2"] + raw["b2"], 0.0)
    logits = h2 @ raw["w3"] + raw["b3"]
    value = logits.mean(axis=-1)
    return logits, value, jnp.zeros_like(value)


if __name__ == "__main__":
    key = jax.random.PRNGKey(0)
    key, k_small, k_big = jax.random.split(key, 3)

    ACTION_DIM = 10
    raw_params = init_params(key, ACTION_DIM)
    params = prepare_params(raw_params)

    # Exercise both a single-step grid (tiny batch) and a multi-step grid.
    for B, k_state in ((8, k_small), (200, k_big)):
        state = jax.random.normal(k_state, (B, 26), jnp.float32)

        logits, value, priority = policy_network_forward(state, params, ACTION_DIM)
        jax.block_until_ready((logits, value, priority))

        ref_logits, ref_value, ref_priority = ref_forward(state, raw_params, ACTION_DIM)

        assert logits.shape == (B, ACTION_DIM)
        assert value.shape == (B,) and priority.shape == (B,)
        assert jnp.allclose(logits, ref_logits, atol=2e-2, rtol=2e-2)
        assert jnp.allclose(value, ref_value, atol=2e-2, rtol=2e-2)
        assert jnp.all(priority == 0.0)

    print("KERNEL_OK")
</pallas_src>

<mosaic_0001>
module attributes {stable_mosaic.version = 11 : i64} {
  func.func @policy_kernel(%arg0: i32, %arg1: memref<16x32xbf16, #tpu.memory_space<vmem>>, %arg2: memref<32x128xbf16, #tpu.memory_space<vmem>>, %arg3: memref<1x128xf32, #tpu.memory_space<vmem>>, %arg4: memref<128x64xbf16, #tpu.memory_space<vmem>>, %arg5: memref<1x64xf32, #tpu.memory_space<vmem>>, %arg6: memref<64x128xbf16, #tpu.memory_space<vmem>>, %arg7: memref<1x128xf32, #tpu.memory_space<vmem>>, %arg8: memref<16x128xbf16, #tpu.memory_space<vmem>>) attributes {dimension_semantics = [#tpu.dimension_semantics<parallel>], iteration_bounds = array<i64: 1>, scalar_prefetch = 0 : i64, scratch_operands = 0 : i64, tpu.core_type = #tpu.core_type<tc>, window_params = [{transform_indices = @transform_0, window_bounds = array<i64: 16, 32>}, {pipeline_mode = #tpu.pipeline_mode<synchronous>, transform_indices = @transform_1, window_bounds = array<i64: 32, 128>}, {pipeline_mode = #tpu.pipeline_mode<synchronous>, transform_indices = @transform_2, window_bounds = array<i64: 1, 128>}, {pipeline_mode = #tpu.pipeline_mode<synchronous>, transform_indices = @transform_3, window_bounds = array<i64: 128, 64>}, {pipeline_mode = #tpu.pipeline_mode<synchronous>, transform_indices = @transform_4, window_bounds = array<i64: 1, 64>}, {pipeline_mode = #tpu.pipeline_mode<synchronous>, transform_indices = @transform_5, window_bounds = array<i64: 64, 128>}, {pipeline_mode = #tpu.pipeline_mode<synchronous>, transform_indices = @transform_6, window_bounds = array<i64: 1, 128>}, {transform_indices = @transform_7, window_bounds = array<i64: 16, 128>}]} {
    %c0 = arith.constant 0 : index
    %c0_0 = arith.constant 0 : index
    %0 = vector.load %arg1[%c0, %c0_0] : memref<16x32xbf16, #tpu.memory_space<vmem>>, vector<16x32xbf16>
    %c0_1 = arith.constant 0 : index
    %c0_2 = arith.constant 0 : index
    %1 = vector.load %arg2[%c0_1, %c0_2] : memref<32x128xbf16, #tpu.memory_space<vmem>>, vector<32x128xbf16>
    %cst = arith.constant dense<0.000000e+00> : vector<16x128xf32>
    %2 = tpu.matmul %0, %1, %cst {dimension_numbers = #tpu.dot_dimension_numbers<[1], [0], [0], [1], [0, 0, 1, 1], [], []>} : vector<16x32xbf16>, vector<32x128xbf16>, vector<16x128xf32> -> vector<16x128xf32>
    %c0_3 = arith.constant 0 : index
    %c0_4 = arith.constant 0 : index
    %3 = vector.load %arg3[%c0_3, %c0_4] : memref<1x128xf32, #tpu.memory_space<vmem>>, vector<1x128xf32>
    %4 = vector.broadcast %3 : vector<1x128xf32> to vector<16x128xf32>
    %5 = arith.addf %2, %4 : vector<16x128xf32>
    %cst_5 = arith.constant 0.000000e+00 : f32
    %6 = vector.broadcast %cst_5 : f32 to vector<16x128xf32>
    %7 = arith.maximumf %5, %6 : vector<16x128xf32>
    %8 = arith.truncf %7 : vector<16x128xf32> to vector<16x128xbf16>
    %c0_6 = arith.constant 0 : index
    %c0_7 = arith.constant 0 : index
    %9 = vector.load %arg4[%c0_6, %c0_7] : memref<128x64xbf16, #tpu.memory_space<vmem>>, vector<128x64xbf16>
    %cst_8 = arith.constant dense<0.000000e+00> : vector<16x64xf32>
    %10 = tpu.matmul %8, %9, %cst_8 {dimension_numbers = #tpu.dot_dimension_numbers<[1], [0], [0], [1], [0, 0, 1, 1], [], []>} : vector<16x128xbf16>, vector<128x64xbf16>, vector<16x64xf32> -> vector<16x64xf32>
    %c0_9 = arith.constant 0 : index
    %c0_10 = arith.constant 0 : index
    %11 = vector.load %arg5[%c0_9, %c0_10] : memref<1x64xf32, #tpu.memory_space<vmem>>, vector<1x64xf32>
    %12 = vector.broadcast %11 : vector<1x64xf32> to vector<16x64xf32>
    %13 = arith.addf %10, %12 : vector<16x64xf32>
    %cst_11 = arith.constant 0.000000e+00 : f32
    %14 = vector.broadcast %cst_11 : f32 to vector<16x64xf32>
    %15 = arith.maximumf %13, %14 : vector<16x64xf32>
    %16 = arith.truncf %15 : vector<16x64xf32> to vector<16x64xbf16>
    %c0_12 = arith.constant 0 : index
    %c0_13 = arith.constant 0 : index
    %17 = vector.load %arg6[%c0_12, %c0_13] : memref<64x128xbf16, #tpu.memory_space<vmem>>, vector<64x128xbf16>
    %cst_14 = arith.constant dense<0.000000e+00> : vector<16x128xf32>
    %18 = tpu.matmul %16, %17, %cst_14 {dimension_numbers = #tpu.dot_dimension_numbers<[1], [0], [0], [1], [0, 0, 1, 1], [], []>} : vector<16x64xbf16>, vector<64x128xbf16>, vector<16x128xf32> -> vector<16x128xf32>
    %c0_15 = arith.constant 0 : index
    %c0_16 = arith.constant 0 : index
    %19 = vector.load %arg7[%c0_15, %c0_16] : memref<1x128xf32, #tpu.memory_space<vmem>>, vector<1x128xf32>
    %20 = vector.broadcast %19 : vector<1x128xf32> to vector<16x128xf32>
    %21 = arith.addf %18, %20 : vector<16x128xf32>
    %cst_17 = arith.constant dense<0.000000e+00> : vector<16xf32>
    %22 = vector.multi_reduction <add>, %21, %cst_17 [1] : vector<16x128xf32> to vector<16xf32>
    %23 = vector.shape_cast %22 : vector<16xf32> to vector<16x1xf32>
    %cst_18 = arith.constant 1.000000e-01 : f32
    %24 = vector.broadcast %cst_18 : f32 to vector<16x1xf32>
    %25 = arith.mulf %23, %24 : vector<16x1xf32>
    %26 = tpu.iota {dimensions = array<i32: 1>} : vector<16x128xi32>
    %c10_i32 = arith.constant 10 : i32
    %27 = vector.broadcast %c10_i32 : i32 to vector<16x128xi32>
    %28 = arith.cmpi eq, %26, %27 : vector<16x128xi32>
    %29 = vector.shape_cast %25 : vector<16x1xf32> to vector<16x1xf32>
    %30 = vector.broadcast %29 : vector<16x1xf32> to vector<16x128xf32>
    %31 = arith.select %28, %30, %21 : vector<16x128xi1>, vector<16x128xf32>
    %32 = arith.truncf %31 : vector<16x128xf32> to vector<16x128xbf16>
    %c0_19 = arith.constant 0 : index
    %c0_20 = arith.constant 0 : index
    %33 = vector.load %arg8[%c0_19, %c0_20] : memref<16x128xbf16, #tpu.memory_space<vmem>>, vector<16x128xbf16>
    tpu.vector_store %arg8[%c0_19, %c0_20], %32 {strides = array<i32>} : memref<16x128xbf16, #tpu.memory_space<vmem>>, vector<16x128xbf16>,
    return
  }
  func.func @transform_0(%arg0: i32) -> (i32, i32) {
    %c0_i32 = arith.constant 0 : i32
    %c0_i32_0 = arith.constant 0 : i32
    return %arg0, %c0_i32 : i32, i32
  }
  func.func @transform_1(%arg0: i32) -> (i32, i32) {
    %c0_i32 = arith.constant 0 : i32
    %c0_i32_0 = arith.constant 0 : i32
    %c0_i32_1 = arith.constant 0 : i32
    return %c0_i32, %c0_i32_0 : i32, i32
  }
  func.func @transform_2(%arg0: i32) -> (i32, i32) {
    %c0_i32 = arith.constant 0 : i32
    %c0_i32_0 = arith.constant 0 : i32
    %c0_i32_1 = arith.constant 0 : i32
    return %c0_i32, %c0_i32_0 : i32, i32
  }
  func.func @transform_3(%arg0: i32) -> (i32, i32) {
    %c0_i32 = arith.constant 0 : i32
    %c0_i32_0 = arith.constant 0 : i32
    %c0_i32_1 = arith.constant 0 : i32
    return %c0_i32, %c0_i32_0 : i32, i32
  }
  func.func @transform_4(%arg0: i32) -> (i32, i32) {
    %c0_i32 = arith.constant 0 : i32
    %c0_i32_0 = arith.constant 0 : i32
    %c0_i32_1 = arith.constant 0 : i32
    return %c0_i32, %c0_i32_0 : i32, i32
  }
  func.func @transform_5(%arg0: i32) -> (i32, i32) {
    %c0_i32 = arith.constant 0 : i32
    %c0_i32_0 = arith.constant 0 : i32
    %c0_i32_1 = arith.constant 0 : i32
    return %c0_i32, %c0_i32_0 : i32, i32
  }
  func.func @transform_6(%arg0: i32) -> (i32, i32) {
    %c0_i32 = arith.constant 0 : i32
    %c0_i32_0 = arith.constant 0 : i32
    %c0_i32_1 = arith.constant 0 : i32
    return %c0_i32, %c0_i32_0 : i32, i32
  }
  func.func @transform_7(%arg0: i32) -> (i32, i32) {
    %c0_i32 = arith.constant 0 : i32
    %c0_i32_0 = arith.constant 0 : i32
    return %arg0, %c0_i32 : i32, i32
  }
}

</mosaic_0001>

<bundles_post_ra>
// kernel: tpu_custom_call.1
= control target key start
LH: loop header
LB: loop body
LE: loop exit
PB: predicated region body
PF: predicated region fallthrough
CT: control target
= control target key end

     0   :  { %s462_s0 = inlined_call_operand.vmem [shape: bf16[16,32], index: 0, kind: input, shape index: {}]   ;;  %s463_s1 = inlined_call_operand.vmem [shape: bf16[32,128], index: 1, kind: input, shape index: {}]   ;;  %s464_s2 = inlined_call_operand.vmem [shape: f32[1,128], index: 2, kind: input, shape index: {}]   ;;  %s465_s3 = inlined_call_operand.vmem [shape: bf16[128,64], index: 3, kind: input, shape index: {}]   ;;  %s466_s4 = inlined_call_operand.vmem [shape: f32[1,64], index: 4, kind: input, shape index: {}]   ;;  %s467_s5 = inlined_call_operand.vmem [shape: bf16[64,128], index: 5, kind: input, shape index: {}]   ;;  %s468_s6 = inlined_call_operand.vmem [shape: f32[1,128], index: 6, kind: input, shape index: {}]   ;;  %s469_s7 = inlined_call_operand.hbm [shape: bf16[16,128], index: 7, kind: output, shape index: {}]  }
   0x1   :  { %v312_v0 = vld [vmem:[%s463_s1 + $0x8] sm:$0xff]  ;;  %v320_v1 = vld [vmem:[%s465_s3 + $0x38] sm:$0xff]  ;;  %v311_v2 = vld [vmem:[%s463_s1] sm:$0xff] }
   0x2   :  { %65 = vmatpush.bf16.msra.mxu0 %v312_v0  ;;  %v319_v3 = vld [vmem:[%s465_s3 + $0x30] sm:$0xff]  ;;  %144 = vmatpush.bf16.msra.mxu1 %v320_v1 }
   0x3   :  { %12 = vsyncpa [#allocation3], 0  ;;  %v310_v4 = vld [vmem:[%s462_s0] sm:$0xff]  ;;  %vm55_vm0 = vcmask 261120   ;;  %v318_v5 = vld [vmem:[%s465_s3 + $0x28] sm:$0xff]  ;;  %vm197_vm1 = vcmask 523264   ;;  %v221_v36 = vlaneseq }
   0x4   :  { %v317_v6 = vld [vmem:[%s465_s3 + $0x20] sm:$0xff]  ;;  %v316_v7 = vld [vmem:[%s465_s3 + $0x18] sm:$0xff]  ;;  %v315_v8 = vld [vmem:[%s465_s3 + $0x10] sm:$0xff]  ;;  %s236_s12 = sshll.u32 %s469_s7, 4  ;;  %s364_s1 = smov 4   ;;  %s237_s12 = int_to_ptr.hbm [resolvable:$true] %s236_s12 }
   0x5   :  { %v314_v9 = vld [vmem:[%s465_s3 + $0x8] sm:$0xff]  ;;  %v313_v10 = vld [vmem:[%s465_s3] sm:$0xff]  ;;  %v324_v19 = vld [vmem:[%s467_s5 + $0x18] sm:$0xff]  ;;  %v222_v38 = vand.u32 127, %v221_v36 }
   0x6   :  { %66 = vmatpush.bf16.msra.mxu0 %v311_v2  ;;  %145 = vmatpush.bf16.msra.mxu1 %v319_v3  ;;  %v333_v12 = vld [vmem:[%s464_s2] ss:$0 sm:$0xff]  ;;  %v323_v20 = vld [vmem:[%s467_s5 + $0x10] sm:$0xff]  ;;  %v322_v21 = vld [vmem:[%s467_s5 + $0x8] sm:$0xff] }
   0x7   :  { %205 = vmatpush.bf16.msra.mxu2 %v324_v19  ;;  %v321_v22 = vld [vmem:[%s467_s5] sm:$0xff]  ;;  %vm223_vm2 = vcmp.eq.s32.totalorder %v222_v38, 10 }
   0x8   :  { %v334_v24 = vld [vmem:[%s466_s4] ss:$0 sm:$0xff]  ;;  %s362_s4 = smov [#allocation2]  }
   0x9   :  { %260 = vmatmul.msk.bf16.vlgmr.msra.gmra.mxu0 %vm55_vm0, %v310_v4  ;;  %v335_v31 = vld [vmem:[%s468_s6] ss:$0 sm:$0xff]  ;;  %s234_s5 = sshll.u32 %s362_s4, 4  ;;  %s363_s6 = smov 64   ;;  %s235_s5 = int_to_ptr.vmem [resolvable:$true] %s234_s5 }
   0xa   :  { %146 = vmatpush.bf16.msra.mxu1 %v318_v5 }
   0xb   :  { %206 = vmatpush.bf16.msra.mxu2 %v323_v20 }
   0xe   :  { %147 = vmatpush.bf16.msra.mxu1 %v317_v6 }
   0xf   :  { %207 = vmatpush.bf16.msra.mxu2 %v322_v21 }
  0x12   :  { %148 = vmatpush.bf16.msra.mxu1 %v316_v7 }
  0x13   :  { %208 = vmatpush.bf16.msra.mxu2 %v321_v22 }
  0x16   :  { %149 = vmatpush.bf16.msra.mxu1 %v315_v8 }
  0x1a   :  { %150 = vmatpush.bf16.msra.mxu1 %v314_v9 }
  0x1e   :  { %151 = vmatpush.bf16.msra.mxu1 %v313_v10 }
  0x86   :  { %v68_v11 = vpop.f32.mrf.mxu0 }
  0x87   :  { %v69_v13 = vadd.f32 %v333_v12, %v68_v11 }
  0x89   :  { %v73_v16 = vmax.f32 %v69_v13, 0.0 }
  0x8e   :  { %v70_v14 = vpop.f32.mrf.mxu0 }
  0x8f   :  { %v71_v15 = vadd.f32 %v333_v12, %v70_v14 }
  0x91   :  { %v74_v17 = vmax.f32 %v71_v15, 0.0 }
  0x93   :  { %v75_v18 = vpack.c.bf16 %v74_v17, %v73_v16 }
  0x95   :  { %152 = vmatmul.bf16.vlgmr.msra.gmra.mxu1 %v75_v18 }
 0x112   :  { %v153_v23 = vpop.f32.mrf.mxu1 }
 0x113   :  { %v154_v25 = vadd.f32 %v334_v24, %v153_v23 }
 0x115   :  { %v158_v28 = vmax.f32 %v154_v25, 0.0 }
 0x11a   :  { %v155_v26 = vpop.f32.mrf.mxu1 }
 0x11b   :  { %v156_v27 = vadd.f32 %v334_v24, %v155_v26 }
 0x11d   :  { %v159_v29 = vmax.f32 %v156_v27, 0.0 }
 0x11f   :  { %v160_v30 = vpack.c.bf16 %v159_v29, %v158_v28 }
 0x121   :  { %309 = vmatmul.msk.bf16.vlgmr.msra.gmra.mxu2 %vm197_vm1, %v160_v30 }
 0x1a4   :  { %v210_v32 = vpop.f32.mrf.mxu2 }
 0x1a5   :  { %v211_v33 = vadd.f32 %v335_v31, %v210_v32 }
 0x1a7   :  { %215 = vadd.xlane.f32.xlu0 %v211_v33 }
 0x1ac   :  { %v212_v34 = vpop.f32.mrf.mxu2 }
 0x1ad   :  { %v213_v35 = vadd.f32 %v335_v31, %v212_v34 }
 0x1af   :  { %217 = vadd.xlane.f32.xlu0 %v213_v35 }
 0x21a   :  { %v216_v37 = vpop.xlane.xlu0 %215 }
 0x21b   :  { %v219_v39 = vmul.f32 0.1, %v216_v37 }
 0x21d   :  { %v224_v42 = vsel %vm223_vm2, %v219_v39, %v211_v33 }
 0x222   :  { %v218_v40 = vpop.xlane.xlu0 %217 }
 0x223   :  { %v220_v41 = vmul.f32 0.1, %v218_v40 }
 0x225   :  { %v225_v43 = vsel %vm223_vm2, %v220_v41, %v213_v35 }
 0x226   :  { %v328_v44 = vpack.c.bf16 %v225_v43, %v224_v42 }
 0x228   :  { %329 = vst [vmem:[#allocation2] sm:$0xff] %v328_v44  }
 0x229   :  { %242 = dma.vmem_to_hbm [thread:$0]  %s235_s5, 128, %s237_s12, [#allocation3], %s363_s6, %s363_s6, %s364_s1  }
 0x22a   :  { %360 = dma.done.wait [#allocation3], 128  }
 0x22b   :  { %361 = vsyncadd [#allocation3], 4294967168 }
 0x22c   :  { %247 = vsyncpa [#allocation3], 1 }

</bundles_post_ra>
